<compile_context>
chip_gen: v7x
topology: tpu7x:2x2x1
jax: 0.10.0
libtpu: 0.0.40
codegen_flags: <defaults>
</compile_context>

<pallas_src>
import functools

import jax
import jax.numpy as jnp
import numpy as np
from jax.experimental import pallas as pl
from jax.experimental.pallas import tpu as pltpu

SIGMA = 0.1
LANE = 128


def _round_up(x, m):
    return (x + m - 1) // m * m


def _vmem_capacity_bytes():
    try:
        info = pltpu.get_tpu_info()
        cap = getattr(info, "vmem_capacity_bytes", None)
        if cap:
            return int(cap)
    except Exception:
        pass
    return 64 * 1024 * 1024  # conservative default (v7x per-TC VMEM)


def _use_fused(fe_in, F, Cls):
    # Fuse W_fe @ k2 into one [fe_in, F*Cls] bf16 slab when it stays small: one deep-K (fe_in)
    # matmul instead of two shallow-K ones. Keep the split path when F*Cls is large.
    return fe_in * F * Cls * 2 <= 8 * 1024 * 1024


def _rbf_kernel_fused(x_ref, wf_ref, cen_ref, sel_ref, out_ref, *, alpha):
    # zk[b, f*Cls+c] = sum_inj x[b,inj] * Wf[inj, f*Cls+c]   (bf16 x bf16 -> f32 accumulate)
    zk = jnp.dot(x_ref[...], wf_ref[...], preferred_element_type=jnp.float32)
    d = zk - cen_ref[...]                       # f32 VPU (sublane-broadcast of the centroid row)
    u = (d * d).astype(jnp.bfloat16)            # squared terms; bf16 only at the MXU boundary
    # quad[b, c] = sum_f u[b, f*Cls+c]  via the exact 0/1 class selector (bf16 MXU, f32 acc)
    quad = jnp.dot(u, sel_ref[...], preferred_element_type=jnp.float32)
    out_ref[...] = jnp.exp(-alpha * quad).astype(out_ref.dtype)


def _rbf_kernel_split(x_ref, wfe_ref, k2_ref, cen_ref, sel_ref, out_ref, *, alpha):
    z = jnp.dot(x_ref[...], wfe_ref[...], preferred_element_type=jnp.float32)       # [TB, F]
    zk = jnp.dot(z.astype(jnp.bfloat16), k2_ref[...],
                 preferred_element_type=jnp.float32)                                # [TB, F*Cls]
    d = zk - cen_ref[...]
    u = (d * d).astype(jnp.bfloat16)
    quad = jnp.dot(u, sel_ref[...], preferred_element_type=jnp.float32)
    out_ref[...] = jnp.exp(-alpha * quad).astype(out_ref.dtype)


def rbf_forward(x, w_fe, kernels, m, N, *, tb_max=1024):
    """x: [B, C, H, W]; w_fe: [C*H*W, F]; kernels: [F, Cls, F]; m: [F, Cls]; N: [Cls]."""
    B = x.shape[0]
    fe_in = int(np.prod(x.shape[1:]))
    F, Cls, Fj = kernels.shape
    assert Fj == F and w_fe.shape == (fe_in, F)

    FC = F * Cls
    C_pad = _round_up(Cls, LANE)
    alpha = 1.0 / (2.0 * SIGMA * SIGMA * F)
    fused = _use_fused(fe_in, F, Cls)

    # ---- wrapper-side operand precompute (f32 math, bf16 MXU slabs) ----
    cen_row = (m.astype(jnp.float32) / N.astype(jnp.float32)[None, :]).reshape(1, FC)
    # k2[j, f*Cls+c] = kernels[f, c, j]
    k2 = jnp.transpose(kernels.astype(jnp.float32).reshape(FC, F))                  # [F, FC]
    sel = jnp.tile(jnp.eye(Cls, dtype=jnp.float32), (F, 1))                         # [FC, Cls]
    sel = jnp.pad(sel, ((0, 0), (0, C_pad - Cls))).astype(jnp.bfloat16)             # 0/1 exact

    if fused:
        wf = (w_fe.astype(jnp.float32) @ k2).astype(jnp.bfloat16)                   # [fe_in, FC]
        weight_args = (wf,)
    else:
        weight_args = (w_fe.astype(jnp.bfloat16), k2.astype(jnp.bfloat16))

    # ---- generation-aware VMEM budgeting & batch-tile choice ----
    bf16, f32 = 2, 4

    def _footprint_bytes(tb):
        if fused:
            resident = fe_in * FC * bf16 + FC * f32 + FC * C_pad * bf16
            inter = tb * FC * (2 * f32 + bf16) + 2 * tb * C_pad * f32
        else:
            resident = (fe_in * F + F * FC) * bf16 + FC * f32 + FC * C_pad * bf16
            inter = tb * F * (f32 + bf16) + tb * FC * (2 * f32 + bf16) + 2 * tb * C_pad * f32
        streamed = 3 * tb * fe_in * bf16 + 2 * tb * C_pad * bf16   # Buffered(3) x + dbl-buf out
        return resident + streamed + inter

    budget = int(0.75 * _vmem_capacity_bytes())        # ~96 MiB on v5e/v6e, ~48 MiB on v7x

    n_steps = max(1, pl.cdiv(B, tb_max))
    while True:
        TB = min(_round_up(pl.cdiv(B, n_steps), 16), _round_up(tb_max, 16))
        if TB <= 16 or _footprint_bytes(TB) <= budget:
            break
        n_steps += 1
    TB = max(TB, 16)
    # Megacore (v7x has 2 TCs): split a single-step grid so both cores get work.
    if _round_up(B, TB) // TB == 1 and TB >= 32:
        TB = _round_up(TB // 2, 16)

    B_pad = _round_up(B, TB)
    grid = (B_pad // TB,)
    vmem_limit = int(min(budget, max(int(1.5 * _footprint_bytes(TB)), 8 * 1024 * 1024)))

    x_flat = x.reshape(B, fe_in).astype(jnp.bfloat16)
    if B_pad != B:
        x_flat = jnp.pad(x_flat, ((0, B_pad - B), (0, 0)))

    kernel = functools.partial(_rbf_kernel_fused if fused else _rbf_kernel_split, alpha=alpha)

    def _call(use_pipeline_mode):
        def spec(shape, index_map, buffers):
            if use_pipeline_mode and buffers is not None:
                return pl.BlockSpec(shape, index_map, pipeline_mode=pl.Buffered(buffers))
            return pl.BlockSpec(shape, index_map)

        if fused:
            weight_specs = [spec((fe_in, FC), lambda i: (0, 0), 1)]
        else:
            weight_specs = [spec((fe_in, F), lambda i: (0, 0), 1),
                            spec((F, FC), lambda i: (0, 0), 1)]
        in_specs = ([spec((TB, fe_in), lambda i: (i, 0), 3)]        # streamed x tile
                    + weight_specs                                   # resident weight slab(s)
                    + [spec((1, FC), lambda i: (0, 0), 1),           # resident centroid row
                       spec((FC, C_pad), lambda i: (0, 0), 1)])      # resident 0/1 selector
        return pl.pallas_call(
            kernel,
            out_shape=jax.ShapeDtypeStruct((B_pad, C_pad), jnp.bfloat16),
            grid_spec=pltpu.PrefetchScalarGridSpec(
                num_scalar_prefetch=0,
                grid=grid,
                in_specs=in_specs,
                out_specs=pl.BlockSpec((TB, C_pad), lambda i: (i, 0)),
            ),
            compiler_params=pltpu.CompilerParams(
                dimension_semantics=("parallel",),
                vmem_limit_bytes=vmem_limit,
            ),
        )(x_flat, *weight_args, cen_row, sel)

    try:
        out = _call(True)
    except Exception:
        # Robust fallback: identical kernel without explicit per-operand buffer counts.
        out = _call(False)

    return out[:B, :Cls].astype(jnp.float32)


def reference_forward(x, w_fe, kernels, m, N):
    """Pure-f32 JAX reference implementing the module's forward semantics."""
    B = x.shape[0]
    x_flat = x.reshape(B, -1).astype(jnp.float32)
    z = x_flat @ w_fe.astype(jnp.float32)
    zk = jnp.einsum('ij,mnj->imn', z, kernels.astype(jnp.float32))               # [B, F, Cls]
    c = (m.astype(jnp.float32) / N.astype(jnp.float32)[None, :])[None]
    dist = ((zk - c) ** 2).mean(axis=1) / (2.0 * SIGMA * SIGMA)
    return jnp.exp(-dist)


def reference_forward_mirrored(x, w_fe, kernels, m, N):
    """Reference that mirrors the kernel's quantization pattern (bf16 slabs / bf16 u / bf16 out,
    f32 math everywhere else) for a tight comparison."""
    B = x.shape[0]
    fe_in = int(np.prod(x.shape[1:]))
    F, Cls, _ = kernels.shape
    FC = F * Cls
    alpha = 1.0 / (2.0 * SIGMA * SIGMA * F)

    x_flat = x.reshape(B, fe_in).astype(jnp.bfloat16).astype(jnp.float32)
    k2 = jnp.transpose(kernels.astype(jnp.float32).reshape(FC, F))               # [F, FC]
    if _use_fused(fe_in, F, Cls):
        wf = (w_fe.astype(jnp.float32) @ k2).astype(jnp.bfloat16).astype(jnp.float32)
        zk = x_flat @ wf
    else:
        wfe = w_fe.astype(jnp.bfloat16).astype(jnp.float32)
        z = (x_flat @ wfe).astype(jnp.bfloat16).astype(jnp.float32)
        zk = z @ k2.astype(jnp.bfloat16).astype(jnp.float32)
    cen_row = (m.astype(jnp.float32) / N.astype(jnp.float32)[None, :]).reshape(1, FC)
    u = ((zk - cen_row) ** 2).astype(jnp.bfloat16).astype(jnp.float32)
    quad = u.reshape(B, F, Cls).sum(axis=1)
    out = jnp.exp(-alpha * quad)
    return out.astype(jnp.bfloat16).astype(jnp.float32)


if __name__ == "__main__":
    # Small shapes consistent with the module (NCHW image input).
    B, C_in, H, W = 2, 4, 16, 16
    in_features = 32       # F: feature-extractor output size
    out_features = 8       # Cls: number of classes
    batch_size = 2         # used for the N init (batch_size / classes), as in the module

    key = jax.random.PRNGKey(0)
    k_x, k_fe, k_kern, k_m = jax.random.split(key, 4)

    x = jax.random.normal(k_x, (B, C_in, H, W), dtype=jnp.float32)

    # TODO(synk): the real `fe` backbone (an arbitrary CNN) is modeled here as flatten + linear.
    fe_in = C_in * H * W
    w_fe = jax.random.normal(k_fe, (fe_in, in_features), dtype=jnp.float32) / np.sqrt(fe_in)

    # kernels ~ kaiming_normal_ (relu): std = sqrt(2 / (out_features * in_features)).
    fan_in = out_features * in_features
    kernels = jax.random.normal(
        k_kern, (in_features, out_features, in_features), dtype=jnp.float32
    ) * np.sqrt(2.0 / fan_in)

    # N as in the module: batch_size / out_features per class.
    N = jnp.full((out_features,), batch_size / out_features, dtype=jnp.float32)
    # Build m so the centroids (m / N) sit near the feature-space embedding of the first
    # example -> exp(-distance) outputs are numerically non-trivial (not all ~0).
    z0 = (x.reshape(B, -1) @ w_fe)[0:1]
    zk0 = jnp.einsum('ij,mnj->imn', z0, kernels)[0]                    # [F, Cls]
    cen0 = zk0 + 0.05 * jax.random.normal(
        k_m, (in_features, out_features), dtype=jnp.float32)
    m = cen0 * N[None, :]

    out = jax.block_until_ready(rbf_forward(x, w_fe, kernels, m, N))

    # Tight check vs a reference with the same quantization pattern as the kernel.
    ref_q = reference_forward_mirrored(x, w_fe, kernels, m, N)
    np.testing.assert_allclose(np.asarray(out), np.asarray(ref_q), rtol=1e-2, atol=1e-2)
    # Coarse check vs the pure-f32 module semantics.
    ref_f32 = reference_forward(x, w_fe, kernels, m, N)
    np.testing.assert_allclose(np.asarray(out), np.asarray(ref_f32), rtol=5e-2, atol=5e-2)

    print("KERNEL_OK")
</pallas_src>

<mosaic_0001>
module attributes {stable_mosaic.version = 11 : i64} {
  func.func @_rbf_kernel_fused(%arg0: i32, %arg1: memref<16x1024xbf16, #tpu.memory_space<vmem>>, %arg2: memref<1024x256xbf16, #tpu.memory_space<vmem>>, %arg3: memref<1x256xf32, #tpu.memory_space<vmem>>, %arg4: memref<256x128xbf16, #tpu.memory_space<vmem>>, %arg5: memref<16x128xbf16, #tpu.memory_space<vmem>>) attributes {dimension_semantics = [#tpu.dimension_semantics<parallel>], iteration_bounds = array<i64: 1>, scalar_prefetch = 0 : i64, scratch_operands = 0 : i64, tpu.core_type = #tpu.core_type<tc>, window_params = [{transform_indices = @transform_0, window_bounds = array<i64: 16, 1024>}, {pipeline_mode = #tpu.pipeline_mode<synchronous>, transform_indices = @transform_1, window_bounds = array<i64: 1024, 256>}, {pipeline_mode = #tpu.pipeline_mode<synchronous>, transform_indices = @transform_2, window_bounds = array<i64: 1, 256>}, {pipeline_mode = #tpu.pipeline_mode<synchronous>, transform_indices = @transform_3, window_bounds = array<i64: 256, 128>}, {transform_indices = @transform_4, window_bounds = array<i64: 16, 128>}]} {
    %c0 = arith.constant 0 : index
    %c0_0 = arith.constant 0 : index
    %0 = vector.load %arg1[%c0, %c0_0] : memref<16x1024xbf16, #tpu.memory_space<vmem>>, vector<16x1024xbf16>
    %c0_1 = arith.constant 0 : index
    %c0_2 = arith.constant 0 : index
    %1 = vector.load %arg2[%c0_1, %c0_2] : memref<1024x256xbf16, #tpu.memory_space<vmem>>, vector<1024x256xbf16>
    %cst = arith.constant dense<0.000000e+00> : vector<16x256xf32>
    %2 = tpu.matmul %0, %1, %cst {dimension_numbers = #tpu.dot_dimension_numbers<[1], [0], [0], [1], [0, 0, 1, 1], [], []>} : vector<16x1024xbf16>, vector<1024x256xbf16>, vector<16x256xf32> -> vector<16x256xf32>
    %c0_3 = arith.constant 0 : index
    %c0_4 = arith.constant 0 : index
    %3 = vector.load %arg3[%c0_3, %c0_4] : memref<1x256xf32, #tpu.memory_space<vmem>>, vector<1x256xf32>
    %4 = vector.broadcast %3 : vector<1x256xf32> to vector<16x256xf32>
    %5 = arith.subf %2, %4 : vector<16x256xf32>
    %6 = arith.mulf %5, %5 : vector<16x256xf32>
    %7 = arith.truncf %6 : vector<16x256xf32> to vector<16x256xbf16>
    %c0_5 = arith.constant 0 : index
    %c0_6 = arith.constant 0 : index
    %8 = vector.load %arg4[%c0_5, %c0_6] : memref<256x128xbf16, #tpu.memory_space<vmem>>, vector<256x128xbf16>
    %cst_7 = arith.constant dense<0.000000e+00> : vector<16x128xf32>
    %9 = tpu.matmul %7, %8, %cst_7 {dimension_numbers = #tpu.dot_dimension_numbers<[1], [0], [0], [1], [0, 0, 1, 1], [], []>} : vector<16x256xbf16>, vector<256x128xbf16>, vector<16x128xf32> -> vector<16x128xf32>
    %cst_8 = arith.constant -1.562500e+00 : f32
    %10 = vector.broadcast %cst_8 : f32 to vector<16x128xf32>
    %11 = arith.mulf %10, %9 : vector<16x128xf32>
    %12 = math.exp %11 : vector<16x128xf32>
    %13 = arith.truncf %12 : vector<16x128xf32> to vector<16x128xbf16>
    %c0_9 = arith.constant 0 : index
    %c0_10 = arith.constant 0 : index
    %14 = vector.load %arg5[%c0_9, %c0_10] : memref<16x128xbf16, #tpu.memory_space<vmem>>, vector<16x128xbf16>
    tpu.vector_store %arg5[%c0_9, %c0_10], %13 {strides = array<i32>} : memref<16x128xbf16, #tpu.memory_space<vmem>>, vector<16x128xbf16>,
    return
  }
  func.func @transform_0(%arg0: i32) -> (i32, i32) {
    %c0_i32 = arith.constant 0 : i32
    %c0_i32_0 = arith.constant 0 : i32
    return %arg0, %c0_i32 : i32, i32
  }
  func.func @transform_1(%arg0: i32) -> (i32, i32) {
    %c0_i32 = arith.constant 0 : i32
    %c0_i32_0 = arith.constant 0 : i32
    %c0_i32_1 = arith.constant 0 : i32
    return %c0_i32, %c0_i32_0 : i32, i32
  }
  func.func @transform_2(%arg0: i32) -> (i32, i32) {
    %c0_i32 = arith.constant 0 : i32
    %c0_i32_0 = arith.constant 0 : i32
    %c0_i32_1 = arith.constant 0 : i32
    return %c0_i32, %c0_i32_0 : i32, i32
  }
  func.func @transform_3(%arg0: i32) -> (i32, i32) {
    %c0_i32 = arith.constant 0 : i32
    %c0_i32_0 = arith.constant 0 : i32
    %c0_i32_1 = arith.constant 0 : i32
    return %c0_i32, %c0_i32_0 : i32, i32
  }
  func.func @transform_4(%arg0: i32) -> (i32, i32) {
    %c0_i32 = arith.constant 0 : i32
    %c0_i32_0 = arith.constant 0 : i32
    return %arg0, %c0_i32 : i32, i32
  }
}

</mosaic_0001>

<bundles_post_ra>
// kernel: tpu_custom_call.1
= control target key start
LH: loop header
LB: loop body
LE: loop exit
PB: predicated region body
PF: predicated region fallthrough
CT: control target
= control target key end

     0   :  { %9 = vsyncpa [#allocation3], 0  ;;  %s1892_s0 = inlined_call_operand.hbm [shape: bf16[16,1024], index: 0, kind: input, shape index: {}]   ;;  %s1893_s1 = inlined_call_operand.hbm [shape: bf16[1024,256], index: 1, kind: input, shape index: {}]   ;;  %s1894_s2 = inlined_call_operand.vmem [shape: f32[1,256], index: 2, kind: input, shape index: {}]   ;;  %s1895_s3 = inlined_call_operand.hbm [shape: bf16[256,128], index: 3, kind: input, shape index: {}]   ;;  %s1896_s4 = inlined_call_operand.hbm [shape: bf16[16,128], index: 4, kind: output, shape index: {}]  }
   0x1   :  { %10 = vsyncpa [#allocation6], 0 }
   0x2   :  { %11 = vsyncpa [#allocation4], 0  ;;  %s1784_s15 = smov [#allocation5]   ;;  %s1690_s19 = scalar_lea.hbm %s1893_s1, 16384 }
   0x3   :  { %s29_s16 = sshll.u32 %s1784_s15, 4  ;;  %p1691_p0 = scmp.ne.s32.totalorder %s1893_s1, %s1690_s19  ;;  %s30_s16 = int_to_ptr.vmem [resolvable:$true] %s29_s16 }
   0x4   :  { %p1694_p1 = scmp.lt.u32.totalorder %s1690_s19, %s1893_s1 }
   0x6   :  { %p1696_p2 = pnand %p1694_p1, %p1691_p0 }
   0x8   :  { %1699 = shalt.err (!%p1696_p2)
}
   0x9   :  { %s1700_s24 = scalar_lea.vmem %s30_s16, 16384  ;;  %p1705_p4 = scmp.lt.s32.totalorder %s30_s16, %s30_s16 }
   0xa   :  { %p1701_p3 = scmp.ne.s32.totalorder %s30_s16, %s1700_s24  ;;  %p1706_p5 = scmp.lt.s32.totalorder %s1700_s24, %s1700_s24 }
   0xc   :  { %p1707_p6 = por %p1706_p5, %p1705_p4 }
   0xe   :  { %p1708_p7 = pnand %p1707_p6, %p1701_p3 }
  0x10   :  { %1711 = shalt.err (!%p1708_p7)
}
  0x11   :  { %s1785_s25 = smov 128   ;;  %s1786_s26 = smov 8  }
  0x12   :  { %35 = dma.hbm_to_vmem [thread:$0]  %s1893_s1, 16384, %s30_s16, [#allocation6], %s1785_s25, %s1785_s25, %s1786_s26  }
  0x13   :  { %s1787_s29 = smov [#allocation2]   ;;  %s1712_s7 = scalar_lea.hbm %s1892_s0, 1024 }
  0x14   :  { %s17_s30 = sshll.u32 %s1787_s29, 4  ;;  %p1713_p8 = scmp.ne.s32.totalorder %s1892_s0, %s1712_s7  ;;  %s18_s30 = int_to_ptr.vmem [resolvable:$true] %s17_s30 }
  0x15   :  { %p1716_p9 = scmp.lt.u32.totalorder %s1712_s7, %s1892_s0 }
  0x17   :  { %p1718_p10 = pnand %p1716_p9, %p1713_p8 }
  0x19   :  { %1721 = shalt.err (!%p1718_p10)
}
  0x1a   :  { %s1722_s12 = scalar_lea.vmem %s18_s30, 1024  ;;  %p1727_p12 = scmp.lt.s32.totalorder %s18_s30, %s18_s30 }
  0x1b   :  { %p1723_p11 = scmp.ne.s32.totalorder %s18_s30, %s1722_s12  ;;  %p1728_p13 = scmp.lt.s32.totalorder %s1722_s12, %s1722_s12 }
  0x1d   :  { %p1729_p0 = por %p1728_p13, %p1727_p12 }
  0x1f   :  { %p1730_p1 = pnand %p1729_p0, %p1723_p11 }
  0x21   :  { %1733 = shalt.err (!%p1730_p1)
}
  0x22   :  { %s1788_s1 = smov 512   ;;  %s1789_s13 = smov 32  }
  0x23   :  { %23 = dma.hbm_to_vmem [thread:$0]  %s1892_s0, 1024, %s18_s30, [#allocation3], %s1788_s1, %s1788_s1, %s1789_s13  }
  0x24   :  { %s1790_s16 = smov [#allocation7]   ;;  %s1734_s20 = scalar_lea.hbm %s1895_s3, 2048 }
  0x25   :  { %s43_s17 = sshll.u32 %s1790_s16, 4  ;;  %p1735_p2 = scmp.ne.s32.totalorder %s1895_s3, %s1734_s20  ;;  %s44_s17 = int_to_ptr.vmem [resolvable:$true] %s43_s17 }
  0x26   :  { %p1738_p3 = scmp.lt.u32.totalorder %s1734_s20, %s1895_s3 }
  0x28   :  { %p1740_p4 = pnand %p1738_p3, %p1735_p2 }
  0x2a   :  { %1743 = shalt.err (!%p1740_p4)
}
  0x2b   :  { %s1744_s25 = scalar_lea.vmem %s44_s17, 2048  ;;  %p1749_p6 = scmp.lt.s32.totalorder %s44_s17, %s44_s17 }
  0x2c   :  { %p1745_p5 = scmp.ne.s32.totalorder %s44_s17, %s1744_s25  ;;  %p1750_p7 = scmp.lt.s32.totalorder %s1744_s25, %s1744_s25 }
  0x2e   :  { %p1751_p8 = por %p1750_p7, %p1749_p6 }
  0x30   :  { %p1752_p9 = pnand %p1751_p8, %p1745_p5 }
  0x32   :  { %1755 = shalt.err (!%p1752_p9)
}
  0x33   :  { %s1791_s0 = smov 64   ;;  %s1792_s26 = smov 4  }
  0x34   :  { %49 = dma.hbm_to_vmem [thread:$0]  %s1895_s3, 2048, %s44_s17, [#allocation6], %s1791_s0, %s1791_s0, %s1792_s26  }
  0x35   :  { %1778 = dma.done.wait [#allocation3], 1024  }
  0x36   :  { %1779 = vsyncadd [#allocation3], 4294966272 }
  0x37   :  { %1780 = dma.done.wait [#allocation6], 18432  }
  0x38   :  { %1781 = vsyncadd [#allocation6], 4294948864  ;;  %v1478_v0 = vld [vmem:[#allocation5 + $0x4] ss:$8 sps:$4 sm:$0xff]   ;;  %v1482_v2 = vld [vmem:[#allocation5] ss:$8 sps:$4 sm:$0xff]  }
  0x39   :  { %v1480_v1 = vld [vmem:[#allocation5 + $0x204] ss:$8 sps:$4 sm:$0xff]   ;;  %876 = vmatprep.subr.bf16.mxu1 %v1478_v0  ;;  %v1483_v3 = vld [vmem:[#allocation5 + $0x200] ss:$8 sps:$4 sm:$0xff]   ;;  %v1484_v4 = vld [vmem:[#allocation5 + $0x14] ss:$8 sps:$4 sm:$0xff]  }
  0x3a   :  { %962 = vmatprep.subr.bf16.mxu0 %v1480_v1  ;;  %877 = vmatpush1.bf16.msra.mxu1 %v1482_v2  ;;  %v1486_v5 = vld [vmem:[#allocation5 + $0x214] ss:$8 sps:$4 sm:$0xff]   ;;  %v1488_v6 = vld [vmem:[#allocation5 + $0x10] ss:$8 sps:$4 sm:$0xff]   ;;  %v1490_v8 = vld [vmem:[#allocation5 + $0x24] ss:$8 sps:$4 sm:$0xff]  }
  0x3b   :  { %963 = vmatpush1.bf16.msra.mxu0 %v1483_v3  ;;  %878 = vmatprep.subr.bf16.mxu1 %v1484_v4  ;;  %v1489_v7 = vld [vmem:[#allocation5 + $0x210] ss:$8 sps:$4 sm:$0xff]   ;;  %v1492_v9 = vld [vmem:[#allocation5 + $0x224] ss:$8 sps:$4 sm:$0xff]   ;;  %v1494_v10 = vld [vmem:[#allocation5 + $0x20] ss:$8 sps:$4 sm:$0xff]  }
  0x3c   :  { %964 = vmatprep.subr.bf16.mxu0 %v1486_v5  ;;  %v1495_v11 = vld [vmem:[#allocation5 + $0x220] ss:$8 sps:$4 sm:$0xff]   ;;  %v1496_v12 = vld [vmem:[#allocation5 + $0x34] ss:$8 sps:$4 sm:$0xff]   ;;  %v1500_v14 = vld [vmem:[#allocation5 + $0x30] ss:$8 sps:$4 sm:$0xff]  }
  0x3d   :  { %v1498_v13 = vld [vmem:[#allocation5 + $0x234] ss:$8 sps:$4 sm:$0xff]   ;;  %v1501_v15 = vld [vmem:[#allocation5 + $0x230] ss:$8 sps:$4 sm:$0xff]   ;;  %v1502_v16 = vld [vmem:[#allocation5 + $0x44] ss:$8 sps:$4 sm:$0xff]  }
  0x3e   :  { %879 = vmatpush1.bf16.msra.mxu1 %v1488_v6  ;;  %v1504_v17 = vld [vmem:[#allocation5 + $0x244] ss:$8 sps:$4 sm:$0xff]   ;;  %v1506_v18 = vld [vmem:[#allocation5 + $0x40] ss:$8 sps:$4 sm:$0xff]   ;;  %v1508_v20 = vld [vmem:[#allocation5 + $0x54] ss:$8 sps:$4 sm:$0xff]  }
  0x3f   :  { %965 = vmatpush1.bf16.msra.mxu0 %v1489_v7  ;;  %880 = vmatprep.subr.bf16.mxu1 %v1490_v8  ;;  %v1507_v19 = vld [vmem:[#allocation5 + $0x240] ss:$8 sps:$4 sm:$0xff]   ;;  %v1510_v21 = vld [vmem:[#allocation5 + $0x254] ss:$8 sps:$4 sm:$0xff]   ;;  %v1512_v22 = vld [vmem:[#allocation5 + $0x50] ss:$8 sps:$4 sm:$0xff]  }
  0x40   :  { %966 = vmatprep.subr.bf16.mxu0 %v1492_v9  ;;  %v1513_v23 = vld [vmem:[#allocation5 + $0x250] ss:$8 sps:$4 sm:$0xff]   ;;  %v1514_v24 = vld [vmem:[#allocation5 + $0x64] ss:$8 sps:$4 sm:$0xff]   ;;  %v1518_v26 = vld [vmem:[#allocation5 + $0x60] ss:$8 sps:$4 sm:$0xff]  }
  0x41   :  { %v1516_v25 = vld [vmem:[#allocation5 + $0x264] ss:$8 sps:$4 sm:$0xff]   ;;  %v1519_v27 = vld [vmem:[#allocation5 + $0x260] ss:$8 sps:$4 sm:$0xff]   ;;  %v1520_v28 = vld [vmem:[#allocation5 + $0x74] ss:$8 sps:$4 sm:$0xff]  }
  0x42   :  { %881 = vmatpush1.bf16.msra.mxu1 %v1494_v10  ;;  %v1522_v29 = vld [vmem:[#allocation5 + $0x274] ss:$8 sps:$4 sm:$0xff]   ;;  %v1524_v30 = vld [vmem:[#allocation5 + $0x70] ss:$8 sps:$4 sm:$0xff]   ;;  %v1526_v32 = vld [vmem:[#allocation5 + $0x84] ss:$8 sps:$4 sm:$0xff]  }
  0x43   :  { %967 = vmatpush1.bf16.msra.mxu0 %v1495_v11  ;;  %882 = vmatprep.subr.bf16.mxu1 %v1496_v12  ;;  %v1525_v31 = vld [vmem:[#allocation5 + $0x270] ss:$8 sps:$4 sm:$0xff]   ;;  %v1528_v33 = vld [vmem:[#allocation5 + $0x284] ss:$8 sps:$4 sm:$0xff]   ;;  %v1530_v34 = vld [vmem:[#allocation5 + $0x80] ss:$8 sps:$4 sm:$0xff]  }
  0x44   :  { %968 = vmatprep.subr.bf16.mxu0 %v1498_v13  ;;  %v1531_v35 = vld [vmem:[#allocation5 + $0x280] ss:$8 sps:$4 sm:$0xff]   ;;  %v1532_v36 = vld [vmem:[#allocation5 + $0x94] ss:$8 sps:$4 sm:$0xff]   ;;  %v1536_v38 = vld [vmem:[#allocation5 + $0x90] ss:$8 sps:$4 sm:$0xff]  }
  0x45   :  { %v1534_v37 = vld [vmem:[#allocation5 + $0x294] ss:$8 sps:$4 sm:$0xff]   ;;  %v1537_v39 = vld [vmem:[#allocation5 + $0x290] ss:$8 sps:$4 sm:$0xff]   ;;  %v1538_v40 = vld [vmem:[#allocation5 + $0xa4] ss:$8 sps:$4 sm:$0xff]  }
  0x46   :  { %883 = vmatpush1.bf16.msra.mxu1 %v1500_v14  ;;  %v1540_v41 = vld [vmem:[#allocation5 + $0x2a4] ss:$8 sps:$4 sm:$0xff]   ;;  %v1542_v42 = vld [vmem:[#allocation5 + $0xa0] ss:$8 sps:$4 sm:$0xff]   ;;  %v1544_v44 = vld [vmem:[#allocation5 + $0xb4] ss:$8 sps:$4 sm:$0xff]  }
  0x47   :  { %969 = vmatpush1.bf16.msra.mxu0 %v1501_v15  ;;  %884 = vmatprep.subr.bf16.mxu1 %v1502_v16  ;;  %v1543_v43 = vld [vmem:[#allocation5 + $0x2a0] ss:$8 sps:$4 sm:$0xff]   ;;  %v1546_v45 = vld [vmem:[#allocation5 + $0x2b4] ss:$8 sps:$4 sm:$0xff]   ;;  %v1548_v46 = vld [vmem:[#allocation5 + $0xb0] ss:$8 sps:$4 sm:$0xff]  }
  0x48   :  { %970 = vmatprep.subr.bf16.mxu0 %v1504_v17  ;;  %v1549_v47 = vld [vmem:[#allocation5 + $0x2b0] ss:$8 sps:$4 sm:$0xff]   ;;  %v60_v48 = vld [vmem:[#allocation2] sm:$0xff]  ;;  %v1556_v58 = vld [vmem:[#allocation5 + $0xd4] ss:$8 sps:$4 sm:$0xff]  }
  0x49   :  { %v64_v49 = vld [vmem:[#allocation2 + $0x20] sm:$0xff]  ;;  %v62_v53 = vld [vmem:[#allocation2 + $0x10] sm:$0xff] }
  0x4a   :  { %885 = vmatpush1.bf16.msra.mxu1 %v1506_v18  ;;  %v1550_v50 = vld [vmem:[#allocation5 + $0xc4] ss:$8 sps:$4 sm:$0xff]   ;;  %v1274_v52 = vcombine.high %v60_v48, %v64_v49  ;;  %v66_v54 = vld [vmem:[#allocation2 + $0x30] sm:$0xff]  ;;  %v1554_v56 = vld [vmem:[#allocation5 + $0xc0] ss:$8 sps:$4 sm:$0xff]   ;;  %v1273_v8 = vcombine.low %v60_v48, %v64_v49 }
  0x4b   :  { %971 = vmatpush1.bf16.msra.mxu0 %v1507_v19  ;;  %886 = vmatprep.subr.bf16.mxu1 %v1508_v20  ;;  %v1552_v51 = vld [vmem:[#allocation5 + $0x2c4] ss:$8 sps:$4 sm:$0xff]   ;;  %v1278_v55 = vcombine.high %v62_v53, %v66_v54  ;;  %v1555_v57 = vld [vmem:[#allocation5 + $0x2c0] ss:$8 sps:$4 sm:$0xff]   ;;  %v1558_v59 = vld [vmem:[#allocation5 + $0x2d4] ss:$8 sps:$4 sm:$0xff]   ;;  %v1277_v10 = vcombine.low %v62_v53, %v66_v54 }
  0x4c   :  { %972 = vmatprep.subr.bf16.mxu0 %v1510_v21  ;;  %908 = vmatprep.mubr.bf16.mxu1 %v1274_v52  ;;  %v1560_v60 = vld [vmem:[#allocation5 + $0xd0] ss:$8 sps:$4 sm:$0xff]   ;;  %v1562_v62 = vld [vmem:[#allocation5 + $0xe4] ss:$8 sps:$4 sm:$0xff]   ;;  %v1566_v0 = vld [vmem:[#allocation5 + $0xe0] ss:$8 sps:$4 sm:$0xff]  }
  0x4d   :  { %994 = vmatprep.mubr.bf16.mxu0 %v1278_v55  ;;  %v1561_v61 = vld [vmem:[#allocation5 + $0x2d0] ss:$8 sps:$4 sm:$0xff]   ;;  %v1564_v63 = vld [vmem:[#allocation5 + $0x2e4] ss:$8 sps:$4 sm:$0xff]   ;;  %v1567_v1 = vld [vmem:[#allocation5 + $0x2e0] ss:$8 sps:$4 sm:$0xff]  }
  0x4e   :  { %887 = vmatpush1.bf16.msra.mxu1 %v1512_v22  ;;  %v1568_v2 = vld [vmem:[#allocation5 + $0xf4] ss:$8 sps:$4 sm:$0xff]   ;;  %v1572_v4 = vld [vmem:[#allocation5 + $0xf0] ss:$8 sps:$4 sm:$0xff]   ;;  %v1576_v6 = vld [vmem:[#allocation5 + $0x104] ss:$8 sps:$4 sm:$0xff]  }
  0x4f   :  { %973 = vmatpush1.bf16.msra.mxu0 %v1513_v23  ;;  %888 = vmatprep.subr.bf16.mxu1 %v1514_v24  ;;  %v1570_v3 = vld [vmem:[#allocation5 + $0x2f4] ss:$8 sps:$4 sm:$0xff]   ;;  %v1573_v5 = vld [vmem:[#allocation5 + $0x2f0] ss:$8 sps:$4 sm:$0xff]   ;;  %v1579_v7 = vld [vmem:[#allocation5 + $0x304] ss:$8 sps:$4 sm:$0xff]  }
  0x50   :  { %974 = vmatprep.subr.bf16.mxu0 %v1516_v25  ;;  %v1574_v9 = vld [vmem:[#allocation5 + $0x100] ss:$8 sps:$4 sm:$0xff]   ;;  %v1582_v12 = vld [vmem:[#allocation5 + $0x114] ss:$8 sps:$4 sm:$0xff]   ;;  %v1580_v14 = vld [vmem:[#allocation5 + $0x110] ss:$8 sps:$4 sm:$0xff]  }
  0x51   :  { %v1577_v11 = vld [vmem:[#allocation5 + $0x300] ss:$8 sps:$4 sm:$0xff]   ;;  %v1585_v13 = vld [vmem:[#allocation5 + $0x314] ss:$8 sps:$4 sm:$0xff]   ;;  %v1583_v15 = vld [vmem:[#allocation5 + $0x310] ss:$8 sps:$4 sm:$0xff]  }
  0x52   :  { %889 = vmatpush1.bf16.msra.mxu1 %v1518_v26  ;;  %v1588_v16 = vld [vmem:[#allocation5 + $0x124] ss:$8 sps:$4 sm:$0xff]   ;;  %v1586_v18 = vld [vmem:[#allocation5 + $0x120] ss:$8 sps:$4 sm:$0xff]   ;;  %v1594_v20 = vld [vmem:[#allocation5 + $0x134] ss:$8 sps:$4 sm:$0xff]  }
  0x53   :  { %975 = vmatpush1.bf16.msra.mxu0 %v1519_v27  ;;  %890 = vmatprep.subr.bf16.mxu1 %v1520_v28  ;;  %v1591_v17 = vld [vmem:[#allocation5 + $0x324] ss:$8 sps:$4 sm:$0xff]   ;;  %v1589_v19 = vld [vmem:[#allocation5 + $0x320] ss:$8 sps:$4 sm:$0xff]   ;;  %v1597_v21 = vld [vmem:[#allocation5 + $0x334] ss:$8 sps:$4 sm:$0xff]  }
  0x54   :  { %976 = vmatprep.subr.bf16.mxu0 %v1522_v29  ;;  %v1592_v22 = vld [vmem:[#allocation5 + $0x130] ss:$8 sps:$4 sm:$0xff]   ;;  %v1600_v24 = vld [vmem:[#allocation5 + $0x144] ss:$8 sps:$4 sm:$0xff]   ;;  %v1598_v26 = vld [vmem:[#allocation5 + $0x140] ss:$8 sps:$4 sm:$0xff]  }
  0x55   :  { %v1595_v23 = vld [vmem:[#allocation5 + $0x330] ss:$8 sps:$4 sm:$0xff]   ;;  %v1603_v25 = vld [vmem:[#allocation5 + $0x344] ss:$8 sps:$4 sm:$0xff]   ;;  %v1601_v27 = vld [vmem:[#allocation5 + $0x340] ss:$8 sps:$4 sm:$0xff]  }
  0x56   :  { %891 = vmatpush1.bf16.msra.mxu1 %v1524_v30  ;;  %v1606_v28 = vld [vmem:[#allocation5 + $0x154] ss:$8 sps:$4 sm:$0xff]   ;;  %v1604_v30 = vld [vmem:[#allocation5 + $0x150] ss:$8 sps:$4 sm:$0xff]   ;;  %v1622_v48 = vld [vmem:[#allocation5 + $0x180] ss:$8 sps:$4 sm:$0xff]  }
  0x57   :  { %977 = vmatpush1.bf16.msra.mxu0 %v1525_v31  ;;  %892 = vmatprep.subr.bf16.mxu1 %v1526_v32  ;;  %v1609_v29 = vld [vmem:[#allocation5 + $0x354] ss:$8 sps:$4 sm:$0xff]   ;;  %v1607_v31 = vld [vmem:[#allocation5 + $0x350] ss:$8 sps:$4 sm:$0xff]   ;;  %v1612_v32 = vld [vmem:[#allocation5 + $0x164] ss:$8 sps:$4 sm:$0xff]  }
  0x58   :  { %978 = vmatprep.subr.bf16.mxu0 %v1528_v33  ;;  %v1615_v33 = vld [vmem:[#allocation5 + $0x364] ss:$8 sps:$4 sm:$0xff]   ;;  %v1625_v49 = vld [vmem:[#allocation5 + $0x380] ss:$8 sps:$4 sm:$0xff]   ;;  %v1628_v52 = vld [vmem:[#allocation5 + $0x190] ss:$8 sps:$4 sm:$0xff]  }
  0x59   :  { %v1631_v53 = vld [vmem:[#allocation5 + $0x390] ss:$8 sps:$4 sm:$0xff]   ;;  %v1636_v54 = vld [vmem:[#allocation5 + $0x1a4] ss:$8 sps:$4 sm:$0xff]  }
  0x5a   :  { %893 = vmatpush1.bf16.msra.mxu1 %v1530_v34  ;;  %v1610_v34 = vld [vmem:[#allocation5 + $0x160] ss:$8 sps:$4 sm:$0xff]   ;;  %v1639_v55 = vld [vmem:[#allocation5 + $0x3a4] ss:$8 sps:$4 sm:$0xff]  }
  0x5b   :  { %979 = vmatpush1.bf16.msra.mxu0 %v1531_v35  ;;  %894 = vmatprep.subr.bf16.mxu1 %v1532_v36  ;;  %v1613_v35 = vld [vmem:[#allocation5 + $0x360] ss:$8 sps:$4 sm:$0xff]  }
  0x5c   :  { %980 = vmatprep.subr.bf16.mxu0 %v1534_v37  ;;  %v1858_v36 = vld [vmem:[#allocation2 + $0x8] sm:$0xff] }
  0x5d   :  { %v1860_v37 = vld [vmem:[#allocation2 + $0x28] sm:$0xff] }
  0x5e   :  { %895 = vmatpush1.bf16.msra.mxu1 %v1536_v38  ;;  %v1862_v38 = vld [vmem:[#allocation2 + $0x18] sm:$0xff] }
  0x5f   :  { %981 = vmatpush1.bf16.msra.mxu0 %v1537_v39  ;;  %896 = vmatprep.subr.bf16.mxu1 %v1538_v40  ;;  %v1864_v39 = vld [vmem:[#allocation2 + $0x38] sm:$0xff] }
  0x60   :  { %982 = vmatprep.subr.bf16.mxu0 %v1540_v41  ;;  %v1618_v40 = vld [vmem:[#allocation5 + $0x174] ss:$8 sps:$4 sm:$0xff]   ;;  %v1276_v41 = vcombine.high %v1858_v36, %v1860_v37 }
  0x62   :  { %897 = vmatpush1.bf16.msra.mxu1 %v1542_v42  ;;  %v1621_v42 = vld [vmem:[#allocation5 + $0x374] ss:$8 sps:$4 sm:$0xff]  }
  0x63   :  { %983 = vmatpush1.bf16.msra.mxu0 %v1543_v43  ;;  %898 = vmatprep.subr.bf16.mxu1 %v1544_v44  ;;  %v1280_v43 = vcombine.high %v1862_v38, %v1864_v39  ;;  %v1616_v44 = vld [vmem:[#allocation5 + $0x170] ss:$8 sps:$4 sm:$0xff]  }
  0x64   :  { %984 = vmatprep.subr.bf16.mxu0 %v1546_v45  ;;  %v1619_v45 = vld [vmem:[#allocation5 + $0x370] ss:$8 sps:$4 sm:$0xff]  }
  0x66   :  { %899 = vmatpush1.bf16.msra.mxu1 %v1548_v46  ;;  %v1624_v46 = vld [vmem:[#allocation5 + $0x184] ss:$8 sps:$4 sm:$0xff]  }
  0x67   :  { %985 = vmatpush1.bf16.msra.mxu0 %v1549_v47  ;;  %900 = vmatprep.subr.bf16.mxu1 %v1550_v50  ;;  %v1627_v47 = vld [vmem:[#allocation5 + $0x384] ss:$8 sps:$4 sm:$0xff]   ;;  %v1630_v50 = vld [vmem:[#allocation5 + $0x194] ss:$8 sps:$4 sm:$0xff]  }
  0x68   :  { %986 = vmatprep.subr.bf16.mxu0 %v1552_v51  ;;  %v1633_v51 = vld [vmem:[#allocation5 + $0x394] ss:$8 sps:$4 sm:$0xff]  }
  0x6a   :  { %901 = vmatpush1.bf16.msra.mxu1 %v1554_v56  ;;  %v1634_v56 = vld [vmem:[#allocation5 + $0x1a0] ss:$8 sps:$4 sm:$0xff]  }
  0x6b   :  { %987 = vmatpush1.bf16.msra.mxu0 %v1555_v57  ;;  %902 = vmatprep.subr.bf16.mxu1 %v1556_v58  ;;  %v1637_v57 = vld [vmem:[#allocation5 + $0x3a0] ss:$8 sps:$4 sm:$0xff]   ;;  %v1642_v58 = vld [vmem:[#allocation5 + $0x1b4] ss:$8 sps:$4 sm:$0xff]  }
  0x6c   :  { %988 = vmatprep.subr.bf16.mxu0 %v1558_v59  ;;  %v1645_v59 = vld [vmem:[#allocation5 + $0x3b4] ss:$8 sps:$4 sm:$0xff]  }
  0x6e   :  { %903 = vmatpush1.bf16.msra.mxu1 %v1560_v60  ;;  %v1640_v60 = vld [vmem:[#allocation5 + $0x1b0] ss:$8 sps:$4 sm:$0xff]  }
  0x6f   :  { %989 = vmatpush1.bf16.msra.mxu0 %v1561_v61  ;;  %904 = vmatprep.subr.bf16.mxu1 %v1562_v62  ;;  %v1643_v61 = vld [vmem:[#allocation5 + $0x3b0] ss:$8 sps:$4 sm:$0xff]   ;;  %v1648_v62 = vld [vmem:[#allocation5 + $0x1c4] ss:$8 sps:$4 sm:$0xff]  }
  0x70   :  { %990 = vmatprep.subr.bf16.mxu0 %v1564_v63  ;;  %v1651_v63 = vld [vmem:[#allocation5 + $0x3c4] ss:$8 sps:$4 sm:$0xff]  }
  0x72   :  { %905 = vmatpush1.bf16.msra.mxu1 %v1566_v0  ;;  %v1646_v0 = vld [vmem:[#allocation5 + $0x1c0] ss:$8 sps:$4 sm:$0xff]  }
  0x73   :  { %991 = vmatpush1.bf16.msra.mxu0 %v1567_v1  ;;  %906 = vmatprep.subr.bf16.mxu1 %v1568_v2  ;;  %v1649_v1 = vld [vmem:[#allocation5 + $0x3c0] ss:$8 sps:$4 sm:$0xff]   ;;  %v1654_v2 = vld [vmem:[#allocation5 + $0x1d4] ss:$8 sps:$4 sm:$0xff]  }
  0x74   :  { %992 = vmatprep.subr.bf16.mxu0 %v1570_v3  ;;  %v1657_v3 = vld [vmem:[#allocation5 + $0x3d4] ss:$8 sps:$4 sm:$0xff]  }
  0x76   :  { %907 = vmatpush1.bf16.msra.mxu1 %v1572_v4  ;;  %v1652_v4 = vld [vmem:[#allocation5 + $0x1d0] ss:$8 sps:$4 sm:$0xff]  }
  0x77   :  { %993 = vmatpush1.bf16.msra.mxu0 %v1573_v5  ;;  %919 = vmatprep.subr.bf16.mxu1 %v1576_v6  ;;  %v1655_v5 = vld [vmem:[#allocation5 + $0x3d0] ss:$8 sps:$4 sm:$0xff]   ;;  %v1660_v6 = vld [vmem:[#allocation5 + $0x1e4] ss:$8 sps:$4 sm:$0xff]  }
  0x78   :  { %1005 = vmatprep.subr.bf16.mxu0 %v1579_v7  ;;  %v1663_v7 = vld [vmem:[#allocation5 + $0x3e4] ss:$8 sps:$4 sm:$0xff]  }
  0x79   :  { %909 = vmatmul.mubr.bf16.vlgmr.msra.gmra.mrb[0].mxu1 %v1273_v8  ;;  %v1658_v8 = vld [vmem:[#allocation5 + $0x1e0] ss:$8 sps:$4 sm:$0xff]  }
  0x7a   :  { %995 = vmatmul.mubr.bf16.vlgmr.msra.gmra.mrb[0].mxu0 %v1277_v10  ;;  %920 = vmatpush1.bf16.msra.mxu1 %v1574_v9  ;;  %v1661_v9 = vld [vmem:[#allocation5 + $0x3e0] ss:$8 sps:$4 sm:$0xff]   ;;  %v1666_v10 = vld [vmem:[#allocation5 + $0x1f4] ss:$8 sps:$4 sm:$0xff]  }
  0x7b   :  { %1006 = vmatpush1.bf16.msra.mxu0 %v1577_v11  ;;  %921 = vmatprep.subr.bf16.mxu1 %v1582_v12  ;;  %v1669_v11 = vld [vmem:[#allocation5 + $0x3f4] ss:$8 sps:$4 sm:$0xff]   ;;  %v1664_v12 = vld [vmem:[#allocation5 + $0x1f0] ss:$8 sps:$4 sm:$0xff]  }
  0x7c   :  { %1007 = vmatprep.subr.bf16.mxu0 %v1585_v13  ;;  %951 = vmatprep.mubr.bf16.mxu1 %v1276_v41  ;;  %v1667_v13 = vld [vmem:[#allocation5 + $0x3f0] ss:$8 sps:$4 sm:$0xff]  }
  0x7d   :  { %1037 = vmatprep.mubr.bf16.mxu0 %v1280_v43 }
  0x7e   :  { %922 = vmatpush1.bf16.msra.mxu1 %v1580_v14  ;;  %v1670_v14 = vld [vmem:[#allocation7 + $0x40] sm:$0xff]  }
  0x7f   :  { %1008 = vmatpush1.bf16.msra.mxu0 %v1583_v15  ;;  %923 = vmatprep.subr.bf16.mxu1 %v1588_v16  ;;  %v1275_v15 = vcombine.low %v1858_v36, %v1860_v37  ;;  %v1279_v16 = vcombine.low %v1862_v38, %v1864_v39 }
  0x80   :  { %1009 = vmatprep.subr.bf16.mxu0 %v1591_v17  ;;  %v1671_v17 = vld [vmem:[#allocation7] sm:$0xff]  }
  0x82   :  { %924 = vmatpush1.bf16.msra.mxu1 %v1586_v18  ;;  %v1672_v18 = vld [vmem:[#allocation7 + $0x48] sm:$0xff]  }
  0x83   :  { %1010 = vmatpush1.bf16.msra.mxu0 %v1589_v19  ;;  %925 = vmatprep.subr.bf16.mxu1 %v1594_v20  ;;  %v1673_v19 = vld [vmem:[#allocation7 + $0x8] sm:$0xff]   ;;  %v1674_v20 = vld [vmem:[#allocation7 + $0x50] sm:$0xff]  }
  0x84   :  { %1011 = vmatprep.subr.bf16.mxu0 %v1597_v21  ;;  %v1675_v21 = vld [vmem:[#allocation7 + $0x10] sm:$0xff]  }
  0x86   :  { %926 = vmatpush1.bf16.msra.mxu1 %v1592_v22  ;;  %v1676_v22 = vld [vmem:[#allocation7 + $0x58] sm:$0xff]  }
  0x87   :  { %1012 = vmatpush1.bf16.msra.mxu0 %v1595_v23  ;;  %927 = vmatprep.subr.bf16.mxu1 %v1600_v24  ;;  %v1677_v23 = vld [vmem:[#allocation7 + $0x18] sm:$0xff]   ;;  %v1678_v24 = vld [vmem:[#allocation7 + $0x60] sm:$0xff]  }
  0x88   :  { %1013 = vmatprep.subr.bf16.mxu0 %v1603_v25  ;;  %v1679_v25 = vld [vmem:[#allocation7 + $0x20] sm:$0xff]  }
  0x8a   :  { %928 = vmatpush1.bf16.msra.mxu1 %v1598_v26  ;;  %v1680_v26 = vld [vmem:[#allocation7 + $0x68] sm:$0xff]  }
  0x8b   :  { %1014 = vmatpush1.bf16.msra.mxu0 %v1601_v27  ;;  %929 = vmatprep.subr.bf16.mxu1 %v1606_v28  ;;  %v1681_v27 = vld [vmem:[#allocation7 + $0x28] sm:$0xff]   ;;  %v1682_v28 = vld [vmem:[#allocation7 + $0x70] sm:$0xff]  }
  0x8c   :  { %1015 = vmatprep.subr.bf16.mxu0 %v1609_v29  ;;  %v1683_v29 = vld [vmem:[#allocation7 + $0x30] sm:$0xff]  }
  0x8e   :  { %930 = vmatpush1.bf16.msra.mxu1 %v1604_v30  ;;  %v1684_v30 = vld [vmem:[#allocation7 + $0x78] sm:$0xff]  }
  0x8f   :  { %1016 = vmatpush1.bf16.msra.mxu0 %v1607_v31  ;;  %931 = vmatprep.subr.bf16.mxu1 %v1612_v32  ;;  %v1685_v31 = vld [vmem:[#allocation7 + $0x38] sm:$0xff]   ;;  %v1050_v32 = vlaneseq }
  0x90   :  { %1017 = vmatprep.subr.bf16.mxu0 %v1615_v33 }
  0x91   :  { %v1051_v33 = vshrl.u32 %v1050_v32, 7 }
  0x92   :  { %932 = vmatpush1.bf16.msra.mxu1 %v1610_v34 }
  0x93   :  { %1018 = vmatpush1.bf16.msra.mxu0 %v1613_v35  ;;  %933 = vmatprep.subr.bf16.mxu1 %v1618_v40  ;;  %v1052_v34 = vsub.s32 0, %v1051_v33  ;;  %v1048_v35 = vld [vmem:[%s1894_s2] sm:$0x3]  ;;  %v1056_v36 = vsub.s32 1, %v1051_v33  ;;  %s1793_s2 = smov [#allocation8]  }
  0x94   :  { %1019 = vmatprep.subr.bf16.mxu0 %v1621_v42  ;;  %s1260_s30 = sshll.u32 %s1793_s2, 4  ;;  %s1261_s30 = int_to_ptr.vmem [resolvable:$true] %s1260_s30 }
  0x95   :  { %v1053_v37 = vrot.slane %v1048_v35, %v1052_v34  ;;  %v1057_v40 = vrot.slane %v1048_v35, %v1056_v36  ;;  %s1756_s5 = scalar_lea.vmem %s1261_s30, 128  ;;  %p1761_p11 = scmp.lt.s32.totalorder %s1261_s30, %s1261_s30 }
  0x96   :  { %934 = vmatpush1.bf16.msra.mxu1 %v1616_v44  ;;  %p1757_p10 = scmp.ne.s32.totalorder %s1261_s30, %s1756_s5  ;;  %p1762_p12 = scmp.lt.s32.totalorder %s1756_s5, %s1756_s5 }
  0x97   :  { %1020 = vmatpush1.bf16.msra.mxu0 %v1619_v45  ;;  %935 = vmatprep.subr.bf16.mxu1 %v1624_v46 }
  0x98   :  { %1021 = vmatprep.subr.bf16.mxu0 %v1627_v47  ;;  %p1763_p13 = por %p1762_p12, %p1761_p11 }
  0x9a   :  { %936 = vmatpush1.bf16.msra.mxu1 %v1622_v48  ;;  %p1764_p0 = pnand %p1763_p13, %p1757_p10 }
  0x9b   :  { %1022 = vmatpush1.bf16.msra.mxu0 %v1625_v49  ;;  %937 = vmatprep.subr.bf16.mxu1 %v1630_v50 }
  0x9c   :  { %1023 = vmatprep.subr.bf16.mxu0 %v1633_v51 }
  0x9e   :  { %938 = vmatpush1.bf16.msra.mxu1 %v1628_v52 }
  0x9f   :  { %1024 = vmatpush1.bf16.msra.mxu0 %v1631_v53  ;;  %939 = vmatprep.subr.bf16.mxu1 %v1636_v54 }
  0xa0   :  { %1025 = vmatprep.subr.bf16.mxu0 %v1639_v55 }
  0xa2   :  { %940 = vmatpush1.bf16.msra.mxu1 %v1634_v56 }
  0xa3   :  { %1026 = vmatpush1.bf16.msra.mxu0 %v1637_v57  ;;  %941 = vmatprep.subr.bf16.mxu1 %v1642_v58 }
  0xa4   :  { %1027 = vmatprep.subr.bf16.mxu0 %v1645_v59 }
  0xa6   :  { %942 = vmatpush1.bf16.msra.mxu1 %v1640_v60 }
  0xa7   :  { %1028 = vmatpush1.bf16.msra.mxu0 %v1643_v61  ;;  %943 = vmatprep.subr.bf16.mxu1 %v1648_v62 }
  0xa8   :  { %1029 = vmatprep.subr.bf16.mxu0 %v1651_v63 }
  0xaa   :  { %944 = vmatpush1.bf16.msra.mxu1 %v1646_v0 }
  0xab   :  { %1030 = vmatpush1.bf16.msra.mxu0 %v1649_v1  ;;  %945 = vmatprep.subr.bf16.mxu1 %v1654_v2 }
  0xac   :  { %1031 = vmatprep.subr.bf16.mxu0 %v1657_v3 }
  0xae   :  { %946 = vmatpush1.bf16.msra.mxu1 %v1652_v4 }
  0xaf   :  { %1032 = vmatpush1.bf16.msra.mxu0 %v1655_v5  ;;  %947 = vmatprep.subr.bf16.mxu1 %v1660_v6 }
  0xb0   :  { %1033 = vmatprep.subr.bf16.mxu0 %v1663_v7 }
  0xb2   :  { %948 = vmatpush1.bf16.msra.mxu1 %v1658_v8 }
  0xb3   :  { %1034 = vmatpush1.bf16.msra.mxu0 %v1661_v9  ;;  %949 = vmatprep.subr.bf16.mxu1 %v1666_v10 }
  0xb4   :  { %1035 = vmatprep.subr.bf16.mxu0 %v1669_v11 }
  0xb6   :  { %950 = vmatpush1.bf16.msra.mxu1 %v1664_v12 }
  0xb7   :  { %1036 = vmatpush1.bf16.msra.mxu0 %v1667_v13  ;;  %1434 = vmatprep.subr.bf16.mxu1 %v1670_v14 }
  0xb9   :  { %952 = vmatmul.mubr.bf16.vlgmr.msra.gmra.mrb[0].mxu1 %v1275_v15 }
  0xba   :  { %1038 = vmatmul.mubr.bf16.vlgmr.msra.gmra.mrb[0].mxu0 %v1279_v16  ;;  %1435 = vmatpush3.bf16.msra.mxu1 %v1671_v17 }
  0xbb   :  { %1436 = vmatprep.subr.bf16.mxu1 %v1672_v18 }
  0xbe   :  { %1437 = vmatpush3.bf16.msra.mxu1 %v1673_v19 }
  0xbf   :  { %1438 = vmatprep.subr.bf16.mxu1 %v1674_v20 }
  0xc2   :  { %1439 = vmatpush3.bf16.msra.mxu1 %v1675_v21 }
  0xc3   :  { %1440 = vmatprep.subr.bf16.mxu1 %v1676_v22 }
  0xc6   :  { %1441 = vmatpush3.bf16.msra.mxu1 %v1677_v23 }
  0xc7   :  { %1442 = vmatprep.subr.bf16.mxu1 %v1678_v24 }
  0xca   :  { %1443 = vmatpush3.bf16.msra.mxu1 %v1679_v25 }
  0xcb   :  { %1444 = vmatprep.subr.bf16.mxu1 %v1680_v26 }
  0xce   :  { %1445 = vmatpush3.bf16.msra.mxu1 %v1681_v27 }
  0xcf   :  { %1446 = vmatprep.subr.bf16.mxu1 %v1682_v28 }
  0xd2   :  { %1447 = vmatpush3.bf16.msra.mxu1 %v1683_v29 }
  0xd3   :  { %1448 = vmatprep.subr.bf16.mxu1 %v1684_v30 }
  0xd6   :  { %1449 = vmatpush3.bf16.msra.mxu1 %v1685_v31 }
 0x18c   :  { %v953_v38 = vpop.f32.mrb[0].mxu1 }
 0x18d   :  { %v1039_v39 = vpop.f32.mrb[0].mxu0  ;;  %v955_v42 = vpop.f32.mrb[1].mxu1 }
 0x18e   :  { %v1456_v41 = vadd.f32 %v1039_v39, %v953_v38  ;;  %v1041_v43 = vpop.f32.mrb[1].mxu0  ;;  %v957_v45 = vpop.f32.mrb[2].mxu1 }
 0x18f   :  { %v1457_v44 = vadd.f32 %v1041_v43, %v955_v42  ;;  %v1043_v46 = vpop.f32.mrb[2].mxu0  ;;  %v959_v49 = vpop.f32.mrb[3].mxu1 }
 0x190   :  { %v1060_v47 = vsub.f32 %v1456_v41, %v1053_v37  ;;  %v1458_v48 = vadd.f32 %v1043_v46, %v957_v45  ;;  %v1045_v50 = vpop.f32.mrb[3].mxu0 }
 0x191   :  { %v1061_v51 = vsub.f32 %v1457_v44, %v1057_v40  ;;  %v1459_v52 = vadd.f32 %v1045_v50, %v959_v49 }
 0x192   :  { %v1062_v53 = vsub.f32 %v1458_v48, %v1053_v37  ;;  %v1064_v55 = vmul.f32 %v1060_v47, %v1060_v47 }
 0x193   :  { %v1063_v54 = vsub.f32 %v1459_v52, %v1057_v40  ;;  %v1065_v57 = vmul.f32 %v1061_v51, %v1061_v51 }
 0x194   :  { %v1066_v56 = vmul.f32 %v1062_v53, %v1062_v53 }
 0x195   :  { %v1067_v58 = vmul.f32 %v1063_v54, %v1063_v54 }
 0x196   :  { %v1068_v59 = vpack.c.bf16 %v1066_v56, %v1064_v55 }
 0x197   :  { %v1069_v60 = vpack.c.bf16 %v1067_v58, %v1065_v57 }
 0x199   :  { %1230 = vmatprep.mubr.bf16.mxu1 %v1069_v60 }
 0x19a   :  { %1231 = vmatmul.mubr.bf16.vlgmr.msra.gmra.mrb[4].mxu1 %v1068_v59 }
 0x26d   :  { %v1450_v61 = vpop.f32.mrb[4].mxu1 }
 0x26e   :  { %v1451_v62 = vpop.f32.mrb[5].mxu1 }
 0x26f   :  { %v1452_v63 = vadd.f32 %v1451_v62, %v1450_v61  ;;  %v1453_v0 = vpop.f32.mrb[6].mxu1 }
 0x270   :  { %v1454_v1 = vpop.f32.mrb[7].mxu1 }
 0x271   :  { %v1239_v2 = vmul.f32 -1.5625, %v1452_v63  ;;  %v1455_v3 = vadd.f32 %v1454_v1, %v1453_v0 }
 0x273   :  { %v1241_v4 = vmul.f32 1.442695, %v1239_v2  ;;  %v1240_v5 = vmul.f32 -1.5625, %v1455_v3 }
 0x275   :  { %v1243_v6 = vmul.f32 1.442695, %v1240_v5  ;;  %1686 = vpow2.f32 %v1241_v4 }
 0x277   :  { %1688 = vpow2.f32 %v1243_v6 }
 0x27f   :  { %v1687_v7 = vpop.eup %1686 }
 0x281   :  { %v1689_v8 = vpop.eup %1688 }
 0x282   :  { %v1432_v9 = vpack.c.bf16 %v1689_v8, %v1687_v7 }
 0x284   :  { %1433 = vst [vmem:[#allocation8] sm:$0xff] %v1432_v9  }
 0x285   :  { %1767 = shalt.err (!%p1764_p0)
}
 0x286   :  { %s1768_s8 = scalar_lea.hbm %s1896_s4, 128 }
 0x287   :  { %p1769_p1 = scmp.ne.s32.totalorder %s1896_s4, %s1768_s8  ;;  %p1772_p2 = scmp.lt.u32.totalorder %s1768_s8, %s1896_s4 }
 0x289   :  { %p1774_p3 = pnand %p1772_p2, %p1769_p1 }
 0x28b   :  { %1777 = shalt.err (!%p1774_p3)
}
 0x28c   :  { %1266 = dma.vmem_to_hbm [thread:$0]  %s1261_s30, 128, %s1896_s4, [#allocation4], %s1791_s0, %s1791_s0, %s1792_s26  }
 0x28d   :  { %1782 = dma.done.wait [#allocation4], 128  }
 0x28e   :  { %1783 = vsyncadd [#allocation4], 4294967168 }
 0x28f   :  { %1270 = vsyncpa [#allocation3], 1 }
 0x290   :  { %1271 = vsyncpa [#allocation6], 1 }
 0x291   :  { %1272 = vsyncpa [#allocation4], 1 }

</bundles_post_ra>
